<compile_context>
chip_gen: v7x
topology: tpu7x:2x2x1
jax: 0.10.0
libtpu: 0.0.40
codegen_flags: <defaults>
</compile_context>

<pallas_src>
import jax
import jax.numpy as jnp
from jax.experimental import pallas as pl
from jax.experimental.pallas import tpu as pltpu

_LANE = 128  # vreg lane width; the node axis lives on lanes inside the kernel.


# ----------------------------------------------------------------------------
# Fused kernel: projection of the K-pre-reduced neighbourhood sums.
#   wt_ref : [out_dim, in_dim]   W_fc^T / K  (uniform entmax weight folded in)
#   ht_ref : [in_dim, tile]      transposed neighbour-sum block (nodes on lanes)
#   ot_ref : [out_dim, tile]     transposed output block (lane-dense store)
# ----------------------------------------------------------------------------
def gat_fused_kernel(wt_ref, ht_ref, ot_ref):
    ot_ref[...] = jnp.dot(
        wt_ref[...], ht_ref[...], preferred_element_type=jnp.float32
    ).astype(ot_ref.dtype)


# ----------------------------------------------------------------------------
# Wrapper: parameter plumbing + neighbour gather / K-reduction glue.
# ----------------------------------------------------------------------------
def gat_layer_forward(h, u, nbr_idx, params, *, block_cols=8192,
                      kernel_dtype=jnp.bfloat16):
    """GATLayer.forward(h, u) on a fixed in-degree-K graph given by nbr_idx."""
    del u  # forward-dead: single-logit entmax == 1, so u/attn_fc2/attn_fc vanish

    # Guard the algebraic simplification: it only holds for a single attention
    # logit per edge (entmax over a singleton dim is identically 1).
    assert params["attn_fc2"].shape[0] == 1 and params["attn_fc"].shape[0] == 1, (
        "forward-value simplification requires attn_fc/attn_fc2 to emit 1 logit")

    w_fc = params["fc"].astype(jnp.float32)            # [in_dim, out_dim]
    N, in_dim = h.shape
    out_dim = w_fc.shape[1]
    K = nbr_idx.shape[1]

    # ---- node tiling: node axis on lanes, tile multiple of 128, grid >= 2 ----
    n_lane = pl.cdiv(N, _LANE) * _LANE                 # N rounded up to lane tile
    tile = min(block_cols, n_lane)
    tile = max(_LANE, (tile // _LANE) * _LANE)
    if n_lane >= 2 * _LANE and tile > n_lane // 2:
        # keep at least two grid steps so v7x's 2 TensorCores both get work
        tile = max(_LANE, ((n_lane // 2) // _LANE) * _LANE)
    n_pad = pl.cdiv(N, tile) * tile
    grid = (n_pad // tile,)

    # ---- XLA glue (message-passing): gather K source rows and pre-reduce ----
    # Summing over K here means the kernel streams [N, in_dim] (not [N, K*in_dim]).
    h_agg_t = h[nbr_idx].sum(axis=1).T.astype(kernel_dtype)      # [in_dim, N]
    if n_pad != N:
        h_agg_t = jnp.pad(h_agg_t, ((0, 0), (0, n_pad - N)))     # zero pad: inert

    # Fold the uniform 1/K entmax weight into the (transposed) projection weights.
    w_t = (w_fc.T / K).astype(kernel_dtype)                      # [out_dim, in_dim]

    out_t = pl.pallas_call(
        gat_fused_kernel,
        out_shape=jax.ShapeDtypeStruct((out_dim, n_pad), kernel_dtype),
        grid=grid,
        in_specs=[
            # constant block index -> weights DMA'd once, not per grid step
            pl.BlockSpec((out_dim, in_dim), lambda i: (0, 0)),
            pl.BlockSpec((in_dim, tile), lambda i: (0, i)),
        ],
        out_specs=pl.BlockSpec((out_dim, tile), lambda i: (0, i)),
        compiler_params=pltpu.CompilerParams(
            dimension_semantics=("parallel",),      # node tiles are independent
            vmem_limit_bytes=32 * 1024 * 1024,      # tiny footprint; v7x-safe
        ),
    )(w_t, h_agg_t)

    # Layout plumbing back to the module's node-major f32 output.
    return out_t[:, :N].T.astype(jnp.float32)


if __name__ == "__main__":
    N, K = 512, 4                          # nodes, constant in-degree
    in_dim, out_dim, num_community = 8, 16, 4

    key = jax.random.PRNGKey(0)
    k_h, k_u, k_fc, k_a2, k_a1 = jax.random.split(key, 5)

    h = jax.random.normal(k_h, (N, in_dim), jnp.float32)
    u = jax.random.normal(k_u, (N, num_community), jnp.float32)

    # Deterministic parameters (PyTorch Linear weight is [out, in]; store W_fc^T).
    bnd_fc = 1.0 / (in_dim ** 0.5)
    w_fc_pt = jax.random.uniform(k_fc, (out_dim, in_dim), jnp.float32, -bnd_fc, bnd_fc)
    bnd_a2 = 1.0 / ((2 * num_community) ** 0.5)
    w_attn2 = jax.random.uniform(k_a2, (1, 2 * num_community), jnp.float32, -bnd_a2, bnd_a2)
    bnd_a1 = 1.0 / ((2 * out_dim) ** 0.5)
    w_attn1 = jax.random.uniform(k_a1, (1, 2 * out_dim), jnp.float32, -bnd_a1, bnd_a1)

    # attn_fc / attn_fc2 are forward-dead (see header) but kept for signature parity.
    params = {"fc": w_fc_pt.T, "attn_fc2": w_attn2, "attn_fc": w_attn1}

    # Fixed in-degree ring graph: node i receives edges from i-2, i-1, i+1, i+2 (mod N).
    ids = jnp.arange(N)
    nbr_idx = jnp.stack([(ids - 2) % N, (ids - 1) % N,
                         (ids + 1) % N, (ids + 2) % N], axis=1).astype(jnp.int32)

    out = jax.block_until_ready(gat_layer_forward(h, u, nbr_idx, params))
    assert out.shape == (N, out_dim)

    # Tight reference: identical bf16 operand/output quantisation, f32 math.
    h_agg_q = h[nbr_idx].sum(axis=1).astype(jnp.bfloat16).astype(jnp.float32)
    w_t_q = (params["fc"].T / K).astype(jnp.bfloat16).astype(jnp.float32)
    expected = jnp.einsum("nd,od->no", h_agg_q, w_t_q,
                          precision=jax.lax.Precision.HIGHEST)
    expected = expected.astype(jnp.bfloat16).astype(jnp.float32)
    err = float(jnp.max(jnp.abs(out - expected)))
    assert jnp.allclose(out, expected, atol=1e-2, rtol=1e-2), err

    # Semantic sanity check vs the exact f32 module math (mean-pool of z over K).
    z_exact = jnp.einsum("nd,do->no", h, params["fc"],
                         precision=jax.lax.Precision.HIGHEST)
    exact = jnp.mean(z_exact[nbr_idx], axis=1)
    err2 = float(jnp.max(jnp.abs(out - exact)))
    assert jnp.allclose(out, exact, atol=5e-2), err2

    print("KERNEL_OK")
</pallas_src>

<mosaic_0001>
module attributes {stable_mosaic.version = 11 : i64} {
  func.func @gat_fused_kernel(%arg0: i32, %arg1: memref<16x8xbf16, #tpu.memory_space<vmem>>, %arg2: memref<8x256xbf16, #tpu.memory_space<vmem>>, %arg3: memref<16x256xbf16, #tpu.memory_space<vmem>>) attributes {dimension_semantics = [#tpu.dimension_semantics<parallel>], iteration_bounds = array<i64: 2>, scalar_prefetch = 0 : i64, scratch_operands = 0 : i64, tpu.core_type = #tpu.core_type<tc>, window_params = [{pipeline_mode = #tpu.pipeline_mode<synchronous>, transform_indices = @transform_0, window_bounds = array<i64: 16, 8>}, {transform_indices = @transform_1, window_bounds = array<i64: 8, 256>}, {transform_indices = @transform_2, window_bounds = array<i64: 16, 256>}]} {
    %c0 = arith.constant 0 : index
    %c0_0 = arith.constant 0 : index
    %0 = vector.load %arg1[%c0, %c0_0] : memref<16x8xbf16, #tpu.memory_space<vmem>>, vector<16x8xbf16>
    %c0_1 = arith.constant 0 : index
    %c0_2 = arith.constant 0 : index
    %1 = vector.load %arg2[%c0_1, %c0_2] : memref<8x256xbf16, #tpu.memory_space<vmem>>, vector<8x256xbf16>
    %cst = arith.constant dense<0.000000e+00> : vector<16x256xf32>
    %2 = tpu.matmul %0, %1, %cst {dimension_numbers = #tpu.dot_dimension_numbers<[1], [0], [0], [1], [0, 0, 1, 1], [], []>} : vector<16x8xbf16>, vector<8x256xbf16>, vector<16x256xf32> -> vector<16x256xf32>
    %3 = arith.truncf %2 : vector<16x256xf32> to vector<16x256xbf16>
    %c0_3 = arith.constant 0 : index
    %c0_4 = arith.constant 0 : index
    %4 = vector.load %arg3[%c0_3, %c0_4] : memref<16x256xbf16, #tpu.memory_space<vmem>>, vector<16x256xbf16>
    tpu.vector_store %arg3[%c0_3, %c0_4], %3 {strides = array<i32>} : memref<16x256xbf16, #tpu.memory_space<vmem>>, vector<16x256xbf16>,
    return
  }
  func.func @transform_0(%arg0: i32) -> (i32, i32) {
    %c0_i32 = arith.constant 0 : i32
    %c0_i32_0 = arith.constant 0 : i32
    %c0_i32_1 = arith.constant 0 : i32
    return %c0_i32, %c0_i32_0 : i32, i32
  }
  func.func @transform_1(%arg0: i32) -> (i32, i32) {
    %c0_i32 = arith.constant 0 : i32
    %c0_i32_0 = arith.constant 0 : i32
    return %c0_i32, %arg0 : i32, i32
  }
  func.func @transform_2(%arg0: i32) -> (i32, i32) {
    %c0_i32 = arith.constant 0 : i32
    %c0_i32_0 = arith.constant 0 : i32
    return %c0_i32, %arg0 : i32, i32
  }
}

</mosaic_0001>

<bundles_post_ra>
// kernel: tpu_custom_call.1
= control target key start
LH: loop header
LB: loop body
LE: loop exit
PB: predicated region body
PF: predicated region fallthrough
CT: control target
= control target key end

     0   :  { %7 = vsyncpa [#allocation3], 0  ;;  %s695_s0 = inlined_call_operand.vmem [shape: bf16[16,8], index: 0, kind: input, shape index: {}]   ;;  %s696_s1 = inlined_call_operand.hbm [shape: bf16[8,512], index: 1, kind: input, shape index: {}]   ;;  %s697_s2 = inlined_call_operand.hbm [shape: bf16[16,512], index: 2, kind: output, shape index: {}]  }
   0x1   :  { %9 = vsyncpa [#allocation3 + $0x1], 0 }
   0x2   :  { %10 = vsyncpa [#allocation4], 0 }
   0x3   :  { %12 = vsyncpa [#allocation4 + $0x1], 0  ;;  %s528_s9 = smov 0   ;;  %s530_s10 = smov 0  }
   0x4   :  { %s532_s11 = smov 0   ;;  %s534_s12 = smov 0  }
   0x5 LB: > { %s549_s13 = sadd.s32 4294967295, %s505_s12   ;;  %s331_s14 = sadd.s32 4294967294, %s505_s12   ;;  %s505_s12 = sphi %s534_s12, %s712_s12   ;;  %s501_s11 = sphi %s532_s11, %s711_s11   ;;  %s497_s10 = sphi %s530_s10, %s710_s10   ;;  %s493_s9 = sphi %s528_s9, %s709_s9  }
   0x6   : > { %s553_s15 = sadd.s32 1, %s505_s12   ;;  %s46_s16 = sadd.s32 1, %s501_s11 }
   0x7   : > { %s43_s17 = ssub.s32 %s505_s12, %s553_s15  ;;  %p53_p0 = scmp.ne.s32.totalorder %s501_s11, %s497_s10 }
   0x8   : > { %p44_p1 = scmp.eq.s32.totalorder %s43_s17, 0  ;;  %p54_p2 = scmp.eq.s32.totalorder %s505_s12, 0 }
   0x9   : > { %p59_p3 = scmp.ne.s32.totalorder %s497_s10, %s493_s9  ;;  %p60_p4 = scmp.eq.s32.totalorder %s549_s13, 0 }
   0xa   : > { %s565_s18 = scalar_select %p44_p1, %s501_s11, %s46_s16  }
   0xb   : > { %p567_p5 = por %p54_p2, %p53_p0  ;;  %p571_p6 = por %p60_p4, %p59_p3 }
   0xc   : > { %p83_p7 = scmp.eq.s32.totalorder %s549_s13, 1  ;;  %p89_p8 = scmp.eq.s32.totalorder %s331_s14, 1 }
   0xd   : > { %p368_p10 = scmp.lt.s32.totalorder %s505_s12, 2  ;;  %s112_s23 = sand.u32 1, %s501_s11  }
   0xe   : > { %p578_p11 = por %p83_p7, %p53_p0  ;;  %p582_p12 = por %p89_p8, %p59_p3 }
   0xf   : > { %s352_s24 = sshll.u32 %s505_s12, 7  ;;  %s334_s25 = sshll.u32 %s112_s23, 3 }
  0x10   : > { %s701_s21 = scalar_select %p578_p11, 1, 0 }
  0x11   : > { %s702_s22 = scalar_select %p582_p12, 1, 0 }
  0x12   : > { %s591_s28 = scalar_lea.hbm %s696_s1, %s352_s24  ;;  %s116_s29 = scalar_lea.vmem [#allocation2], %s334_s25 }
  0x13   : > { %s124_s30 = sshll.u32 %s116_s29, 4  ;;  %p595_p13 = pnand %p368_p10, %p567_p5  ;;  %s599_s30 = int_to_ptr.vmem [resolvable:$true] %s124_s30 }
  0x14   : > { %s113_s4 = scalar_lea.sflag [#allocation3], %s112_s23  ;;  %s409_s5 = scalar_lea.hbm %s591_s28, 128 }
  0x15   : > { %p410_p2 = scmp.ne.s32.totalorder %s591_s28, %s409_s5  ;;  %p411_p3 = pneg %p595_p13 }
  0x16   : > { %s414_s8 = scalar_lea.hbm %s696_s1, 256  ;;  %p415_p5 = scmp.lt.u32.totalorder %s591_s28, %s696_s1 }
  0x17   : > { %p412_p4 = pnand %p411_p3, %p410_p2  ;;  %p416_p8 = scmp.lt.u32.totalorder %s414_s8, %s409_s5 }
  0x18   : > { %p418_p9 = scmp.lt.u32.totalorder %s409_s5, %s591_s28 }
  0x19   : > { %p413_p7 = pneg %p412_p4  ;;  %p417_p10 = por %p416_p8, %p415_p5 }
  0x1b   : > { %p419_p0 = por %p418_p9, %p417_p10 }
  0x1d   : > { %p420_p1 = pnand %p419_p0, %p413_p7 }
  0x1f   : > { %423 = shalt.err (!%p420_p1)
}
  0x20   : > { %s424_s17 = scalar_lea.vmem %s599_s30, 128  ;;  %s507_s19 = smov [#allocation2]  }
  0x21   : > { %p425_p2 = scmp.ne.s32.totalorder %s599_s30, %s424_s17  ;;  %s429_s23 = sshll.u32 %s507_s19, 4  ;;  %s430_s23 = int_to_ptr.vmem [resolvable:$false] %s429_s23 }
  0x22   : > { %s431_s24 = scalar_lea.vmem %s430_s23, 256  ;;  %p432_p11 = scmp.lt.s32.totalorder %s599_s30, %s430_s23 }
  0x23   : > { %p427_p4 = pnand %p425_p2, %p411_p3  ;;  %p433_p5 = scmp.lt.s32.totalorder %s431_s24, %s424_s17 }
  0x25   : > { %p428_p12 = pneg %p427_p4  ;;  %p434_p8 = por %p433_p5, %p432_p11 }
  0x27   : > { %p435_p9 = pnand %p434_p8, %p428_p12 }
  0x29   : > { %438 = shalt.err (!%p435_p9)
}
  0x2a   : > { %363 = dma.hbm_to_vmem [thread:$0]  (!%p595_p13), %s591_s28, 128, %s599_s30, %s113_s4  }
  0x2b   : > { %p704_p0 = scmp.lt.s32.totalorder %s505_s12, 3  ;;  %p705_p1 = scmp.ge.s32.totalorder %s505_s12, 1 }
  0x2d   : > { %p130_p3 = pnand %p705_p1, %p704_p0 }
  0x2e   : > { %s633_s25 = sand.u32 (!%p130_p3), 1, %s497_s10  }
  0x2f   : > { %133 = sbr.rel (%p130_p3) target bundleno = 295 (0x127), region = 28  ;;  %s338_s26 = sshll.u32 (!%p130_p3), %s633_s25, 3 }
  0x30   : > { %s136_s27 = scalar_lea.sflag (!%p130_p3), [#allocation3], %s633_s25  ;;  %s139_s29 = scalar_lea.vmem (!%p130_p3), [#allocation2], %s338_s26 }
  0x36   : > { %484 = dma.done.wait (%p571_p6), %s136_s27, 128  }
  0x37   : > { %486 = vsyncadd (%p571_p6), %s136_s27, 4294967168  ;;  %v508_v0 = vmov 0   ;;  %v165_v1 = vld [vmem:[%s139_s29] sm:$0xff]  ;;  %vm180_vm0 = vcmask 1043456   ;;  %vm176_vm1 = vcmask 64512   ;;  %s339_s20 = sshll.u32 %s633_s25, 4 }
  0x38   : > { %219 = vmatprep.mubr.bf16.mxu0 %v508_v0  ;;  %v342_v2 = vcombine.high %v165_v1, %v165_v1  ;;  %v341_v3 = vcombine.low %v165_v1, %v165_v1  ;;  %v408_v5 = vld [vmem:[%s695_s0] sm:$0xff]   ;;  %s159_s3 = scalar_lea.vmem [#allocation5], %s339_s20  ;;  %s355_s5 = sshll.u32 %s549_s13, 7 }
  0x39   : > { %s258_s4 = sshll.u32 %s159_s3, 4  ;;  %s651_s8 = scalar_lea.hbm %s697_s2, %s355_s5  ;;  %s646_s4 = int_to_ptr.vmem [resolvable:$true] %s258_s4 }
  0x3a   : > { %343 = vmatprep.subr.msk.bf16.mxu0 %vm180_vm0, %v342_v2  ;;  %v182_v4 = vsel %vm180_vm0, %v341_v3, 0  ;;  %s245_s14 = scalar_lea.sflag [#allocation4], %s633_s25  ;;  %s439_s16 = scalar_lea.vmem %s646_s4, 256 }
  0x3b   : > { %188 = vmatpush1.bf16.msra.mxu0 %v182_v4  ;;  %p440_p6 = scmp.ne.s32.totalorder %s646_s4, %s439_s16  ;;  %p706_p11 = scmp.ne.s32.totalorder %s701_s21, 0 }
  0x3c   : > { %s509_s13 = smov [#allocation5]  }
  0x3d   : > { %p441_p12 = pnand %p440_p6, %p706_p11  ;;  %s443_s17 = sshll.u32 %s509_s13, 4  ;;  %s444_s17 = int_to_ptr.vmem [resolvable:$false] %s443_s17 }
  0x3e   : > { %344 = vmatmul.mubr.msk.bf16.vlgmr.msra.gmra.mrb[0].mxu0 %vm176_vm1, %v408_v5  ;;  %s445_s19 = scalar_lea.vmem %s444_s17, 512  ;;  %p446_p7 = scmp.lt.s32.totalorder %s646_s4, %s444_s17 }
  0x3f   : > { %p442_p13 = pneg %p441_p12  ;;  %p447_p10 = scmp.lt.s32.totalorder %s445_s19, %s439_s16 }
  0x41   : > { %p448_p2 = por %p447_p10, %p446_p7 }
  0x43   : > { %p449_p4 = pnand %p448_p2, %p442_p13 }
 0x111   : > { %v221_v6 = vpop.f32.mrb[0].mxu0 }
 0x112   : > { %v223_v7 = vpop.f32.mrb[1].mxu0 }
 0x113   : > { %v353_v8 = vpack.c.bf16 %v223_v7, %v221_v6  ;;  %v225_v9 = vpop.f32.mrb[2].mxu0 }
 0x114   : > { %v227_v10 = vpop.f32.mrb[3].mxu0 }
 0x115   : > { %242 = vst [vmem:[%s159_s3] sm:$0xff] %v353_v8  ;;  %v354_v11 = vpack.c.bf16 %v227_v10, %v225_v9 }
 0x117   : > { %243 = vst [vmem:[%s159_s3 + $0x8] sm:$0xff] %v354_v11 }
 0x118   : > { %452 = shalt.err (!%p449_p4)
}
 0x119   : > { %s453_s23 = scalar_lea.hbm %s651_s8, 256  ;;  %s457_s27 = scalar_lea.hbm %s697_s2, 512 }
 0x11a   : > { %p454_p5 = scmp.ne.s32.totalorder %s651_s8, %s453_s23  ;;  %p458_p0 = scmp.lt.u32.totalorder %s651_s8, %s697_s2 }
 0x11b   : > { %p459_p1 = scmp.lt.u32.totalorder %s457_s27, %s453_s23  ;;  %p461_p6 = scmp.lt.u32.totalorder %s453_s23, %s651_s8 }
 0x11c   : > { %p455_p8 = pnand %p454_p5, %p706_p11 }
 0x11d   : > { %p460_p3 = por %p459_p1, %p458_p0 }
 0x11e   : > { %p456_p9 = pneg %p455_p8 }
 0x11f   : > { %p462_p12 = por %p461_p6, %p460_p3 }
 0x121   : > { %p463_p13 = pnand %p462_p12, %p456_p9 }
 0x123   : > { %466 = shalt.err (!%p463_p13)
}
 0x124   : > { %s510_s30 = smov 128   ;;  %s511_s20 = smov 256  }
 0x125   : > { %s512_s3 = smov 8  }
 0x126   : > { %358 = dma.vmem_to_hbm [thread:$0]  (%p706_p11), %s646_s4, 256, %s651_s8, %s245_s14, %s510_s30, %s511_s20, %s512_s3  }
 0x127 PF: > { %s273_s5 = sand.u32 1, %s493_s9   ;;  %p707_p7 = scmp.ne.s32.totalorder %s702_s22, 0 }
 0x128   : > { %p708_p10 = scmp.ge.s32.totalorder %s505_s12, 2  ;;  %s274_s6 = scalar_lea.sflag [#allocation4], %s273_s5 }
 0x12a   : > { %p365_p2 = pnand %p708_p10, %p707_p7 }
 0x12c   : > { %488 = dma.done.wait (!%p365_p2), %s274_s6, 256  }
 0x12d   : > { %490 = vsyncadd (!%p365_p2), %s274_s6, 4294967040  ;;  %p15_p4 = scmp.ge.s32.totalorder %s553_s15, 4   ;;  %s709_s9 = smov %s497_s10 }
 0x12e   : > { %s710_s10 = smov %s501_s11  ;;  %s711_s11 = smov %s565_s18 }
 0x12f   : > { %s712_s12 = smov %s553_s15  ;;  %17 = sbr.rel (!%p15_p4) target bundleno = 5 (0x5), region = 73 }
 0x136   :  { %279 = vsyncpa [#allocation3], 1 }
 0x137   :  { %281 = vsyncpa [#allocation3 + $0x1], 1 }
 0x138   :  { %282 = vsyncpa [#allocation4], 1 }
 0x139   :  { %284 = vsyncpa [#allocation4 + $0x1], 1 }

</bundles_post_ra>
